<compile_context>
chip_gen: v5e
topology: v5e:2x2
jax: 0.10.0
libtpu: 0.0.40
codegen_flags: <defaults>
</compile_context>

<pallas_src>
import jax
import jax.numpy as jnp
from jax import lax
from jax.experimental import pallas as pl
from jax.experimental.pallas import tpu as pltpu


def _round_up(x, m):
    return (x + m - 1) // m * m


def ffn_kernel(x_ref, w1_ref, b1_ref, w2_ref, b2_ref, o_ref, acc_ref):
    """Grid = (M/tm, PF/tk). Row tile i is parallel; PF tile k is the
    reduction axis accumulated into a VMEM f32 scratch.

      x_ref  : (tm, H)    row tile (block index constant across k -> one DMA)
      w1_ref : (tk, H)    fc1 weight slice, PyTorch [out, in] layout
      b1_ref : (1, tk)    fc1 bias slice
      w2_ref : (H, tk)    fc2 weight slice, PyTorch [out, in] layout
      b2_ref : (1, H)     fc2 bias
      o_ref  : (tm, H)    output tile (stored on the last k step)
      acc_ref: (tm, H) f32 accumulator
    """
    k = pl.program_id(1)

    @pl.when(k == 0)
    def _():
        acc_ref[...] = jnp.zeros_like(acc_ref)

    # h_k = relu(x @ w1_k.T + b1_k): contract the trailing H dims so the
    # [out, in] weight layout is used directly (no transpose in HBM).
    h = lax.dot_general(
        x_ref[...], w1_ref[...],
        dimension_numbers=(((1,), (1,)), ((), ())),
        preferred_element_type=jnp.float32)
    h = jnp.maximum(h + b1_ref[...], 0.0)
    # dropout: identity in eval mode.
    # TODO(synk): training-mode dropout via pltpu.prng_seed / prng_random_bits.

    # acc += h_k @ w2_k.T  (contract the tk dims)
    acc_ref[...] += lax.dot_general(
        h.astype(x_ref.dtype), w2_ref[...],
        dimension_numbers=(((1,), (1,)), ((), ())),
        preferred_element_type=jnp.float32)

    @pl.when(k == pl.num_programs(1) - 1)
    def _():
        o_ref[...] = (acc_ref[...] + b2_ref[...]).astype(o_ref.dtype)


def positionwise_ffn(x, w1, b1, w2, b2, *, tm=256, tk=512):
    """x: [B, S, H]; w1: [PF, H], b1: [PF]; w2: [H, PF], b2: [H]
    (PyTorch nn.Linear layouts). Returns [B, S, H]."""
    B, S, H = x.shape
    PF = w1.shape[0]
    M = B * S

    # Effective tiles: row tile multiple of 8, K tile multiple of 128.
    H_pad = _round_up(H, 128)
    tm_eff = _round_up(min(tm, _round_up(M, 8)), 8)
    M_pad = _round_up(M, tm_eff)
    PF_pad = _round_up(PF, 128)
    tk_eff = _round_up(min(tk, PF_pad), 128)
    PF_pad = _round_up(PF_pad, tk_eff)

    x2d = x.reshape(M, H)
    if (M_pad, H_pad) != (M, H):
        x2d = jnp.pad(x2d, ((0, M_pad - M), (0, H_pad - H)))
    if (PF_pad, H_pad) != (PF, H):       # static no-op for aligned real models
        w1 = jnp.pad(w1, ((0, PF_pad - PF), (0, H_pad - H)))
        w2 = jnp.pad(w2, ((0, H_pad - H), (0, PF_pad - PF)))
        b1 = jnp.pad(b1, (0, PF_pad - PF))
        b2 = jnp.pad(b2, (0, H_pad - H))
    b1_2d = b1.reshape(1, PF_pad)
    b2_2d = b2.reshape(1, H_pad)

    grid = (M_pad // tm_eff, PF_pad // tk_eff)

    itemsize = jnp.dtype(x.dtype).itemsize
    cost = pl.CostEstimate(
        flops=4 * M_pad * H_pad * PF_pad,
        transcendentals=0,
        bytes_accessed=int((x2d.size + w1.size + b1_2d.size + w2.size
                            + b2_2d.size + M_pad * H_pad) * itemsize))

    out = pl.pallas_call(
        ffn_kernel,
        out_shape=jax.ShapeDtypeStruct((M_pad, H_pad), x.dtype),
        grid_spec=pltpu.PrefetchScalarGridSpec(
            num_scalar_prefetch=0,
            grid=grid,
            in_specs=[
                pl.BlockSpec((tm_eff, H_pad), lambda i, k: (i, 0)),
                pl.BlockSpec((tk_eff, H_pad), lambda i, k: (k, 0)),
                pl.BlockSpec((1, tk_eff), lambda i, k: (0, k)),
                pl.BlockSpec((H_pad, tk_eff), lambda i, k: (0, k)),
                pl.BlockSpec((1, H_pad), lambda i, k: (0, 0)),
            ],
            out_specs=pl.BlockSpec((tm_eff, H_pad), lambda i, k: (i, 0)),
            scratch_shapes=[pltpu.VMEM((tm_eff, H_pad), jnp.float32)],
        ),
        compiler_params=pltpu.CompilerParams(
            dimension_semantics=("parallel", "arbitrary")),
        cost_estimate=cost,
    )(x2d, w1, b1_2d, w2, b2_2d)

    if (M_pad, H_pad) != (M, H):
        out = out[:M, :H]
    return out.reshape(B, S, H)


def _ref_ffn(x, w1, b1, w2, b2):
    return jnp.maximum(x @ w1.T + b1, 0.0) @ w2.T + b2


if __name__ == "__main__":
    key = jax.random.PRNGKey(0)

    # --- toy shape matching the module's forward: [batch, seq, hid_dim] ---
    batch, seq, hid_dim, pf_dim = 2, 8, 32, 64
    kx, k1, k2, k3, k4 = jax.random.split(key, 5)
    x = jax.random.normal(kx, (batch, seq, hid_dim), dtype=jnp.float32)
    w1 = jax.random.normal(k1, (pf_dim, hid_dim), dtype=jnp.float32) * 0.1
    b1 = jax.random.normal(k2, (pf_dim,), dtype=jnp.float32) * 0.1
    w2 = jax.random.normal(k3, (hid_dim, pf_dim), dtype=jnp.float32) * 0.1
    b2 = jax.random.normal(k4, (hid_dim,), dtype=jnp.float32) * 0.1

    y = positionwise_ffn(x, w1, b1, w2, b2)
    jax.block_until_ready(y)
    ref = _ref_ffn(x, w1, b1, w2, b2)
    assert jnp.allclose(y, ref, atol=1e-5, rtol=1e-5)

    # bf16 operands (f32 accumulation inside the kernel), loose tolerance.
    y_bf = positionwise_ffn(x.astype(jnp.bfloat16),
                            w1.astype(jnp.bfloat16), b1.astype(jnp.bfloat16),
                            w2.astype(jnp.bfloat16), b2.astype(jnp.bfloat16))
    jax.block_until_ready(y_bf)
    assert jnp.allclose(y_bf.astype(jnp.float32), ref, atol=1e-1, rtol=1e-1)

    # --- 128-aligned shape exercising multiple row tiles and K-accumulation ---
    batch2, seq2, hid2, pf2 = 2, 64, 128, 256
    kx2, k5, k6, k7, k8 = jax.random.split(jax.random.PRNGKey(1), 5)
    x2 = jax.random.normal(kx2, (batch2, seq2, hid2), dtype=jnp.float32)
    w1b = jax.random.normal(k5, (pf2, hid2), dtype=jnp.float32) * 0.05
    b1b = jax.random.normal(k6, (pf2,), dtype=jnp.float32) * 0.05
    w2b = jax.random.normal(k7, (hid2, pf2), dtype=jnp.float32) * 0.05
    b2b = jax.random.normal(k8, (hid2,), dtype=jnp.float32) * 0.05

    y2 = positionwise_ffn(x2, w1b, b1b, w2b, b2b, tm=64, tk=128)
    jax.block_until_ready(y2)
    ref2 = _ref_ffn(x2, w1b, b1b, w2b, b2b)
    assert jnp.allclose(y2, ref2, atol=1e-4, rtol=1e-4)

    print("KERNEL_OK")
</pallas_src>

<mosaic_0001>
module attributes {stable_mosaic.version = 11 : i64} {
  func.func @ffn_kernel(%arg0: i32, %arg1: i32, %arg2: memref<16x128xf32, #tpu.memory_space<vmem>>, %arg3: memref<128x128xf32, #tpu.memory_space<vmem>>, %arg4: memref<1x128xf32, #tpu.memory_space<vmem>>, %arg5: memref<128x128xf32, #tpu.memory_space<vmem>>, %arg6: memref<1x128xf32, #tpu.memory_space<vmem>>, %arg7: memref<16x128xf32, #tpu.memory_space<vmem>>, %arg8: memref<16x128xf32, #tpu.memory_space<vmem>>) attributes {dimension_semantics = [#tpu.dimension_semantics<parallel>, #tpu.dimension_semantics<arbitrary>], iteration_bounds = array<i64: 1, 1>, scalar_prefetch = 0 : i64, scratch_operands = 1 : i64, tpu.core_type = #tpu.core_type<tc>, window_params = [{transform_indices = @transform_0, window_bounds = array<i64: 16, 128>}, {transform_indices = @transform_1, window_bounds = array<i64: 128, 128>}, {transform_indices = @transform_2, window_bounds = array<i64: 1, 128>}, {transform_indices = @transform_3, window_bounds = array<i64: 128, 128>}, {pipeline_mode = #tpu.pipeline_mode<synchronous>, transform_indices = @transform_4, window_bounds = array<i64: 1, 128>}, {transform_indices = @transform_5, window_bounds = array<i64: 16, 128>}]} {
    %c0_i32 = arith.constant 0 : i32
    %0 = arith.cmpi eq, %arg1, %c0_i32 : i32
    %1 = arith.extui %0 : i1 to i32
    %c0_i32_0 = arith.constant 0 : i32
    %2 = arith.cmpi ne, %1, %c0_i32_0 : i32
    scf.if %2 {
      %cst_16 = arith.constant 0.000000e+00 : f32
      %19 = vector.broadcast %cst_16 : f32 to vector<16x128xf32>
      %c0_17 = arith.constant 0 : index
      %c0_18 = arith.constant 0 : index
      %20 = vector.load %arg8[%c0_17, %c0_18] : memref<16x128xf32, #tpu.memory_space<vmem>>, vector<16x128xf32>
      tpu.vector_store %arg8[%c0_17, %c0_18], %19 {strides = array<i32>} : memref<16x128xf32, #tpu.memory_space<vmem>>, vector<16x128xf32>,
    } else {
    }
    %c0 = arith.constant 0 : index
    %c0_1 = arith.constant 0 : index
    %3 = vector.load %arg2[%c0, %c0_1] : memref<16x128xf32, #tpu.memory_space<vmem>>, vector<16x128xf32>
    %c0_2 = arith.constant 0 : index
    %c0_3 = arith.constant 0 : index
    %4 = vector.load %arg3[%c0_2, %c0_3] : memref<128x128xf32, #tpu.memory_space<vmem>>, vector<128x128xf32>
    %cst = arith.constant dense<0.000000e+00> : vector<16x128xf32>
    %5 = tpu.matmul %3, %4, %cst {dimension_numbers = #tpu.dot_dimension_numbers<[1], [1], [0], [0], [0, 0, 1, 0], [], []>} : vector<16x128xf32>, vector<128x128xf32>, vector<16x128xf32> -> vector<16x128xf32>
    %c0_4 = arith.constant 0 : index
    %c0_5 = arith.constant 0 : index
    %6 = vector.load %arg4[%c0_4, %c0_5] : memref<1x128xf32, #tpu.memory_space<vmem>>, vector<1x128xf32>
    %7 = vector.broadcast %6 : vector<1x128xf32> to vector<16x128xf32>
    %8 = arith.addf %5, %7 : vector<16x128xf32>
    %cst_6 = arith.constant 0.000000e+00 : f32
    %9 = vector.broadcast %cst_6 : f32 to vector<16x128xf32>
    %10 = arith.maximumf %8, %9 : vector<16x128xf32>
    %c0_7 = arith.constant 0 : index
    %c0_8 = arith.constant 0 : index
    %11 = vector.load %arg8[%c0_7, %c0_8] : memref<16x128xf32, #tpu.memory_space<vmem>>, vector<16x128xf32>
    %c0_9 = arith.constant 0 : index
    %c0_10 = arith.constant 0 : index
    %12 = vector.load %arg5[%c0_9, %c0_10] : memref<128x128xf32, #tpu.memory_space<vmem>>, vector<128x128xf32>
    %cst_11 = arith.constant dense<0.000000e+00> : vector<16x128xf32>
    %13 = tpu.matmul %10, %12, %cst_11 {dimension_numbers = #tpu.dot_dimension_numbers<[1], [1], [0], [0], [0, 0, 1, 0], [], []>} : vector<16x128xf32>, vector<128x128xf32>, vector<16x128xf32> -> vector<16x128xf32>
    %14 = arith.addf %11, %13 : vector<16x128xf32>
    %c0_12 = arith.constant 0 : index
    %c0_13 = arith.constant 0 : index
    %15 = vector.load %arg8[%c0_12, %c0_13] : memref<16x128xf32, #tpu.memory_space<vmem>>, vector<16x128xf32>
    tpu.vector_store %arg8[%c0_12, %c0_13], %14 {strides = array<i32>} : memref<16x128xf32, #tpu.memory_space<vmem>>, vector<16x128xf32>,
    %c0_i32_14 = arith.constant 0 : i32
    %16 = arith.cmpi eq, %arg1, %c0_i32_14 : i32
    %17 = arith.extui %16 : i1 to i32
    %c0_i32_15 = arith.constant 0 : i32
    %18 = arith.cmpi ne, %17, %c0_i32_15 : i32
    scf.if %18 {
      %c0_16 = arith.constant 0 : index
      %c0_17 = arith.constant 0 : index
      %19 = vector.load %arg8[%c0_16, %c0_17] : memref<16x128xf32, #tpu.memory_space<vmem>>, vector<16x128xf32>
      %c0_18 = arith.constant 0 : index
      %c0_19 = arith.constant 0 : index
      %20 = vector.load %arg6[%c0_18, %c0_19] : memref<1x128xf32, #tpu.memory_space<vmem>>, vector<1x128xf32>
      %21 = vector.broadcast %20 : vector<1x128xf32> to vector<16x128xf32>
      %22 = arith.addf %19, %21 : vector<16x128xf32>
      %c0_20 = arith.constant 0 : index
      %c0_21 = arith.constant 0 : index
      %23 = vector.load %arg7[%c0_20, %c0_21] : memref<16x128xf32, #tpu.memory_space<vmem>>, vector<16x128xf32>
      tpu.vector_store %arg7[%c0_20, %c0_21], %22 {strides = array<i32>} : memref<16x128xf32, #tpu.memory_space<vmem>>, vector<16x128xf32>,
    } else {
    }
    return
  }
  func.func @transform_0(%arg0: i32, %arg1: i32) -> (i32, i32) {
    %c0_i32 = arith.constant 0 : i32
    %c0_i32_0 = arith.constant 0 : i32
    return %arg0, %c0_i32 : i32, i32
  }
  func.func @transform_1(%arg0: i32, %arg1: i32) -> (i32, i32) {
    %c0_i32 = arith.constant 0 : i32
    %c0_i32_0 = arith.constant 0 : i32
    return %arg1, %c0_i32 : i32, i32
  }
  func.func @transform_2(%arg0: i32, %arg1: i32) -> (i32, i32) {
    %c0_i32 = arith.constant 0 : i32
    %c0_i32_0 = arith.constant 0 : i32
    return %c0_i32, %arg1 : i32, i32
  }
  func.func @transform_3(%arg0: i32, %arg1: i32) -> (i32, i32) {
    %c0_i32 = arith.constant 0 : i32
    %c0_i32_0 = arith.constant 0 : i32
    return %c0_i32, %arg1 : i32, i32
  }
  func.func @transform_4(%arg0: i32, %arg1: i32) -> (i32, i32) {
    %c0_i32 = arith.constant 0 : i32
    %c0_i32_0 = arith.constant 0 : i32
    %c0_i32_1 = arith.constant 0 : i32
    return %c0_i32, %c0_i32_0 : i32, i32
  }
  func.func @transform_5(%arg0: i32, %arg1: i32) -> (i32, i32) {
    %c0_i32 = arith.constant 0 : i32
    %c0_i32_0 = arith.constant 0 : i32
    return %arg0, %c0_i32 : i32, i32
  }
}

</mosaic_0001>

<bundles_post_ra>
// kernel: tpu_custom_call.1
= control target key start
LH: loop header
LB: loop body
LE: loop exit
PB: predicated region body
PF: predicated region fallthrough
CT: control target
= control target key end

     0   :  { %10 = vsyncpa [#allocation4], 0  ;;  %s407_s0 = inlined_call_operand.hbm [shape: f32[16,128], index: 0, kind: input, shape index: {}]   ;;  %s408_s1 = inlined_call_operand.hbm [shape: f32[128,128], index: 1, kind: input, shape index: {}]   ;;  %s409_s2 = inlined_call_operand.vmem [shape: f32[1,128], index: 2, kind: input, shape index: {}]   ;;  %s410_s3 = inlined_call_operand.hbm [shape: f32[128,128], index: 3, kind: input, shape index: {}]   ;;  %s411_s4 = inlined_call_operand.vmem [shape: f32[1,128], index: 4, kind: input, shape index: {}]   ;;  %s412_s5 = inlined_call_operand.hbm [shape: f32[16,128], index: 5, kind: output, shape index: {}]  }
   0x1   :  { %11 = vsyncpa [#allocation7], 0 }
   0x2   :  { %12 = vsyncpa [#allocation5], 0  ;;  %s30_s20 = sshll.u32 %s408_s1, 4  ;;  %s341_s21 = smov [#allocation6]   ;;  %s31_s20 = int_to_ptr.hbm [resolvable:$true] %s30_s20 }
   0x3   :  { %s32_s22 = sshll.u32 %s341_s21, 4  ;;  %s17_s25 = sshll.u32 %s407_s0, 4  ;;  %s33_s22 = int_to_ptr.vmem [resolvable:$true] %s32_s22  ;;  %s18_s25 = int_to_ptr.hbm [resolvable:$true] %s17_s25 }
   0x4   :  { %s342_s26 = smov 128   ;;  %s343_s27 = smov 8  }
   0x5   :  { %38 = dma.hbm_to_vmem [thread:$0]  %s31_s20, 2048, %s33_s22, [#allocation7], %s342_s26, %s342_s26, %s343_s27  }
   0x6   :  { %s344_s28 = smov [#allocation3]   ;;  %s45_s1 = sshll.u32 %s410_s3, 4  ;;  %s46_s1 = int_to_ptr.hbm [resolvable:$true] %s45_s1 }
   0x7   :  { %s19_s29 = sshll.u32 %s344_s28, 4  ;;  %s345_s0 = smov [#allocation8]   ;;  %s20_s29 = int_to_ptr.vmem [resolvable:$true] %s19_s29 }
   0x8   :  { %25 = dma.hbm_to_vmem [thread:$0]  %s18_s25, 256, %s20_s29, [#allocation4], %s342_s26, %s342_s26, %s343_s27  }
   0x9   :  { %s47_s7 = sshll.u32 %s345_s0, 4  ;;  %s48_s7 = int_to_ptr.vmem [resolvable:$true] %s47_s7 }
   0xa   :  { %53 = dma.hbm_to_vmem [thread:$0]  %s46_s1, 2048, %s48_s7, [#allocation7], %s342_s26, %s342_s26, %s343_s27  }
   0xb   :  { %335 = dma.done.wait [#allocation4], 256  }
   0xc   :  { %336 = vsyncadd [#allocation4], 4294967040 }
   0xd   :  { %337 = dma.done.wait [#allocation7], 4096  }
   0xe   :  { %338 = vsyncadd [#allocation7], 4294963200  ;;  %v91_v0 = vld [vmem:[#allocation6 + $0x78] sm:$0xff]  ;;  %v90_v1 = vld [vmem:[#allocation6 + $0x70] sm:$0xff]  ;;  %s346_s11 = smov [#allocation9]  }
   0xf   :  { %199 = vmatpush.xpose.msra.mxu2 %v91_v0  ;;  %96 = vmatpush.xpose.msra.mxu0 %v91_v0  ;;  %v89_v2 = vld [vmem:[#allocation6 + $0x68] sm:$0xff]  ;;  %v88_v3 = vld [vmem:[#allocation6 + $0x60] sm:$0xff]  ;;  %v87_v4 = vld [vmem:[#allocation6 + $0x58] sm:$0xff]  ;;  %s183_s12 = sshll.u32 %s346_s11, 4  ;;  %s184_s12 = int_to_ptr.vmem [resolvable:$true] %s183_s12 }
  0x10   :  { %v86_v5 = vld [vmem:[#allocation6 + $0x50] sm:$0xff]  ;;  %v85_v6 = vld [vmem:[#allocation6 + $0x48] sm:$0xff]  ;;  %v84_v7 = vld [vmem:[#allocation6 + $0x40] sm:$0xff] }
  0x11   :  { %v83_v8 = vld [vmem:[#allocation6 + $0x38] sm:$0xff]  ;;  %v82_v10 = vld [vmem:[#allocation6 + $0x30] sm:$0xff]  ;;  %v81_v12 = vld [vmem:[#allocation6 + $0x28] sm:$0xff] }
  0x12   :  { %v138_v9 = vld [vmem:[#allocation8 + $0x78] sm:$0xff]  ;;  %v137_v11 = vld [vmem:[#allocation8 + $0x70] sm:$0xff]  ;;  %v136_v13 = vld [vmem:[#allocation8 + $0x68] sm:$0xff] }
  0x13   :  { %200 = vmatpush.xpose.msra.mxu2 %v90_v1  ;;  %97 = vmatpush.xpose.msra.mxu0 %v90_v1  ;;  %v80_v14 = vld [vmem:[#allocation6 + $0x20] sm:$0xff]  ;;  %v79_v16 = vld [vmem:[#allocation6 + $0x18] sm:$0xff]  ;;  %v78_v18 = vld [vmem:[#allocation6 + $0x10] sm:$0xff] }
  0x14   :  { %215 = vmatpush.xpose.msra.mxu3 %v138_v9  ;;  %139 = vmatpush.xpose.msra.mxu1 %v138_v9  ;;  %v135_v15 = vld [vmem:[#allocation8 + $0x60] sm:$0xff]  ;;  %v134_v17 = vld [vmem:[#allocation8 + $0x58] sm:$0xff]  ;;  %v133_v19 = vld [vmem:[#allocation8 + $0x50] sm:$0xff] }
  0x15   :  { %v77_v20 = vld [vmem:[#allocation6 + $0x8] sm:$0xff]  ;;  %v76_v22 = vld [vmem:[#allocation6] sm:$0xff]  ;;  %v75_v24 = vld [vmem:[#allocation3 + $0x8] sm:$0xff] }
  0x16   :  { %v132_v21 = vld [vmem:[#allocation8 + $0x48] sm:$0xff]  ;;  %v131_v23 = vld [vmem:[#allocation8 + $0x40] sm:$0xff]  ;;  %v74_v25 = vld [vmem:[#allocation3] sm:$0xff] }
  0x17   :  { %201 = vmatpush.xpose.msra.mxu2 %v89_v2  ;;  %98 = vmatpush.xpose.msra.mxu0 %v89_v2  ;;  %v130_v26 = vld [vmem:[#allocation8 + $0x38] sm:$0xff]  ;;  %v129_v27 = vld [vmem:[#allocation8 + $0x30] sm:$0xff]  ;;  %v128_v28 = vld [vmem:[#allocation8 + $0x28] sm:$0xff] }
  0x18   :  { %216 = vmatpush.xpose.msra.mxu3 %v137_v11  ;;  %140 = vmatpush.xpose.msra.mxu1 %v137_v11  ;;  %v127_v29 = vld [vmem:[#allocation8 + $0x20] sm:$0xff]  ;;  %v126_v30 = vld [vmem:[#allocation8 + $0x18] sm:$0xff]  ;;  %v125_v31 = vld [vmem:[#allocation8 + $0x10] sm:$0xff] }
  0x19   :  { %v124_v32 = vld [vmem:[#allocation8 + $0x8] sm:$0xff]  ;;  %v123_v33 = vld [vmem:[#allocation8] sm:$0xff]  ;;  %v237_v34 = vld [vmem:[%s409_s2] ss:$0 sm:$0xff]  ;;  %s185_s2 = sshll.u32 %s412_s5, 4  ;;  %s186_s2 = int_to_ptr.hbm [resolvable:$true] %s185_s2 }
  0x1a   :  { %v238_v41 = vld [vmem:[%s411_s4] ss:$0 sm:$0xff] }
  0x1b   :  { %202 = vmatpush.xpose.msra.mxu2 %v88_v3  ;;  %99 = vmatpush.xpose.msra.mxu0 %v88_v3 }
  0x1c   :  { %217 = vmatpush.xpose.msra.mxu3 %v136_v13  ;;  %141 = vmatpush.xpose.msra.mxu1 %v136_v13 }
  0x1f   :  { %203 = vmatpush.xpose.msra.mxu2 %v87_v4  ;;  %100 = vmatpush.xpose.msra.mxu0 %v87_v4 }
  0x20   :  { %218 = vmatpush.xpose.msra.mxu3 %v135_v15  ;;  %142 = vmatpush.xpose.msra.mxu1 %v135_v15 }
  0x23   :  { %204 = vmatpush.xpose.msra.mxu2 %v86_v5  ;;  %101 = vmatpush.xpose.msra.mxu0 %v86_v5 }
  0x24   :  { %219 = vmatpush.xpose.msra.mxu3 %v134_v17  ;;  %143 = vmatpush.xpose.msra.mxu1 %v134_v17 }
  0x27   :  { %205 = vmatpush.xpose.msra.mxu2 %v85_v6  ;;  %102 = vmatpush.xpose.msra.mxu0 %v85_v6 }
  0x28   :  { %220 = vmatpush.xpose.msra.mxu3 %v133_v19  ;;  %144 = vmatpush.xpose.msra.mxu1 %v133_v19 }
  0x2b   :  { %206 = vmatpush.xpose.msra.mxu2 %v84_v7  ;;  %103 = vmatpush.xpose.msra.mxu0 %v84_v7 }
  0x2c   :  { %221 = vmatpush.xpose.msra.mxu3 %v132_v21  ;;  %145 = vmatpush.xpose.msra.mxu1 %v132_v21 }
  0x2f   :  { %207 = vmatpush.xpose.msra.mxu2 %v83_v8  ;;  %104 = vmatpush.xpose.msra.mxu0 %v83_v8 }
  0x30   :  { %222 = vmatpush.xpose.msra.mxu3 %v131_v23  ;;  %146 = vmatpush.xpose.msra.mxu1 %v131_v23 }
  0x33   :  { %208 = vmatpush.xpose.msra.mxu2 %v82_v10  ;;  %105 = vmatpush.xpose.msra.mxu0 %v82_v10 }
  0x34   :  { %223 = vmatpush.xpose.msra.mxu3 %v130_v26  ;;  %147 = vmatpush.xpose.msra.mxu1 %v130_v26 }
  0x37   :  { %209 = vmatpush.xpose.msra.mxu2 %v81_v12  ;;  %106 = vmatpush.xpose.msra.mxu0 %v81_v12 }
  0x38   :  { %224 = vmatpush.xpose.msra.mxu3 %v129_v27  ;;  %148 = vmatpush.xpose.msra.mxu1 %v129_v27 }
  0x3b   :  { %210 = vmatpush.xpose.msra.mxu2 %v80_v14  ;;  %107 = vmatpush.xpose.msra.mxu0 %v80_v14 }
  0x3c   :  { %225 = vmatpush.xpose.msra.mxu3 %v128_v28  ;;  %149 = vmatpush.xpose.msra.mxu1 %v128_v28 }
  0x3f   :  { %211 = vmatpush.xpose.msra.mxu2 %v79_v16  ;;  %108 = vmatpush.xpose.msra.mxu0 %v79_v16 }
  0x40   :  { %226 = vmatpush.xpose.msra.mxu3 %v127_v29  ;;  %150 = vmatpush.xpose.msra.mxu1 %v127_v29 }
  0x43   :  { %212 = vmatpush.xpose.msra.mxu2 %v78_v18  ;;  %109 = vmatpush.xpose.msra.mxu0 %v78_v18 }
  0x44   :  { %227 = vmatpush.xpose.msra.mxu3 %v126_v30  ;;  %151 = vmatpush.xpose.msra.mxu1 %v126_v30 }
  0x47   :  { %213 = vmatpush.xpose.msra.mxu2 %v77_v20  ;;  %110 = vmatpush.xpose.msra.mxu0 %v77_v20 }
  0x48   :  { %228 = vmatpush.xpose.msra.mxu3 %v125_v31  ;;  %152 = vmatpush.xpose.msra.mxu1 %v125_v31 }
  0x4b   :  { %214 = vmatpush.xpose.msra.mxu2 %v76_v22  ;;  %111 = vmatpush.xpose.msra.mxu0 %v76_v22 }
  0x4c   :  { %229 = vmatpush.xpose.msra.mxu3 %v124_v32  ;;  %153 = vmatpush.xpose.msra.mxu1 %v124_v32 }
  0x4e   :  { %115 = vmatmul.f32.vlgmr.msra.gmra.mxu2 %v75_v24  ;;  %112 = vmatmul.f32.vlgmr.msra.gmra.mxu0 %v74_v25 }
  0x50   :  { %230 = vmatpush.xpose.msra.mxu3 %v123_v33  ;;  %154 = vmatpush.xpose.msra.mxu1 %v123_v33 }
  0xcb   :  { %v113_v35 = vpop.f32.mrf.mxu0 }
  0xcc   :  { %v114_v36 = vadd.f32 %v237_v34, %v113_v35 }
  0xce   :  { %v119_v37 = vmax.f32 %v114_v36, 0.0 }
  0xd0   :  { %155 = vmatmul.f32.vlgmr.msra.gmra.mxu1 %v119_v37 }
  0xd1   :  { %v116_v38 = vpop.f32.mrf.mxu2 }
  0xd2   :  { %v117_v39 = vadd.f32 %v237_v34, %v116_v38 }
  0xd4   :  { %v120_v40 = vmax.f32 %v117_v39, 0.0 }
  0xd6   :  { %158 = vmatmul.f32.vlgmr.msra.gmra.mxu3 %v120_v40 }
 0x14d   :  { %v156_v42 = vpop.f32.mrf.mxu1 }
 0x14e   :  { %v175_v43 = vadd.f32 %v238_v41, %v156_v42 }
 0x150   :  { %177 = vst [vmem:[#allocation9] sm:$0xff] %v175_v43 }
 0x159   :  { %v159_v44 = vpop.f32.mrf.mxu3 }
 0x15a   :  { %v176_v45 = vadd.f32 %v238_v41, %v159_v44 }
 0x15c   :  { %178 = vst [vmem:[#allocation9 + $0x8] sm:$0xff] %v176_v45 }
 0x15d   :  { %191 = dma.vmem_to_hbm [thread:$0]  %s184_s12, 256, %s186_s2, [#allocation5], %s342_s26, %s342_s26, %s343_s27  }
 0x15e   :  { %339 = dma.done.wait [#allocation5], 256  }
 0x15f   :  { %340 = vsyncadd [#allocation5], 4294967040 }
 0x160   :  { %196 = vsyncpa [#allocation4], 1 }
 0x161   :  { %197 = vsyncpa [#allocation7], 1 }
 0x162   :  { %198 = vsyncpa [#allocation5], 1 }

</bundles_post_ra>
